<compile_context>
chip_gen: v6e
topology: v6e:2x2x1
jax: 0.10.0
libtpu: 0.0.40
codegen_flags: <defaults>
</compile_context>

<pallas_src>
import functools
import math

import jax
import jax.numpy as jnp
from jax.experimental import pallas as pl
from jax.experimental.pallas import tpu as pltpu

LANE = 128
SUBLANE = 8


def _round_up(x, m):
    return (x + m - 1) // m * m


# ---------------------------------------------------------------------------
# Mirror of build_fully_connected: produce an op list instead of nn.Sequential.
# ---------------------------------------------------------------------------
def build_fully_connected_spec(fully_connected_hidden_layers, input_dim, output_dim):
    dimension_list = [input_dim] + fully_connected_hidden_layers + [output_dim]
    ops = []
    for i in range(len(dimension_list) - 1):
        if dimension_list[i] == "relu":
            ops.append(("relu",))
        elif isinstance(dimension_list[i], int):
            j = 1
            while not isinstance(dimension_list[i + j], int):
                j += 1
            ops.append(("linear", dimension_list[i], dimension_list[i + j]))
        else:
            raise ValueError(
                "Got invalid value in fully_connected_hidden_layers parameter: "
                f"only ints and 'relu' are accepted but got {dimension_list[i]}."
            )
    return ops


def init_fc_params(ops, key):
    """Deterministic nn.Linear-style init (uniform +/- 1/sqrt(fan_in))."""
    params = []
    for op in ops:
        if op[0] != "linear":
            continue
        _, din, dout = op
        key, kw, kb = jax.random.split(key, 3)
        bound = 1.0 / math.sqrt(float(din))
        # Stored already transposed: [in, out]  (PyTorch keeps [out, in]).
        w = jax.random.uniform(kw, (din, dout), jnp.float32, -bound, bound)
        b = jax.random.uniform(kb, (1, dout), jnp.float32, -bound, bound)
        params.append((w, b))
    return params


def _pad_fc_params(params, ops):
    """Zero-pad every linear layer's output dim to a multiple of 128 lanes.

    Padded lanes stay exactly zero through the whole head (zero weight columns,
    zero bias, ReLU(0)=0, zero weight rows in the next layer), so numerics are
    unchanged and the final store is lane-dense.
    """
    padded = []
    prev_out_pad = None
    li = 0
    for op in ops:
        if op[0] != "linear":
            continue
        w, b = params[li]
        din, dout = w.shape
        din_p = din if prev_out_pad is None else prev_out_pad
        dout_p = _round_up(dout, LANE)
        w_p = jnp.zeros((din_p, dout_p), jnp.float32).at[:din, :dout].set(w)
        b_p = jnp.zeros((1, dout_p), jnp.float32).at[:, :dout].set(b)
        padded.append((w_p, b_p))
        prev_out_pad = dout_p
        li += 1
    return padded


# ---------------------------------------------------------------------------
# Pallas kernel: streamed sequence-sum + (mean * FC head) finalize.
# ---------------------------------------------------------------------------
def _classifier_kernel(ops, inv_s, n_param_refs, hs_ref, *refs):
    param_refs = refs[:n_param_refs]
    out_ref = refs[n_param_refs]
    acc_ref = refs[n_param_refs + 1]

    s_idx = pl.program_id(1)

    @pl.when(s_idx == 0)
    def _init():
        acc_ref[...] = jnp.zeros_like(acc_ref)

    # Accumulate the sequence sum of this [TB, TS, H] tile in f32.
    acc_ref[...] += jnp.sum(hs_ref[...].astype(jnp.float32), axis=1)

    @pl.when(s_idx == pl.num_programs(1) - 1)
    def _finalize():
        # torch.mean(dim=1) == accumulated sum * (1/S); S is static so the
        # scale is a compile-time constant (no extra reduction pass).
        x = acc_ref[...] * inv_s  # [TB, H]
        p = 0
        for op in ops:
            if op[0] == "linear":
                w = param_refs[p][...]        # [in, out_padded]
                bias = param_refs[p + 1][...]  # [1, out_padded]
                x = jnp.dot(x, w, preferred_element_type=jnp.float32) + bias
                p += 2
            else:  # relu
                x = jnp.maximum(x, 0.0)
        out_ref[...] = x.astype(out_ref.dtype)  # lane-dense [TB, C_pad] store


def bert_classifier_forward(last_hidden_state, params, ops, nb_output_classes,
                            *, tb=None, ts=None):
    """Pallas forward: last_hidden_state [B, S, H] -> logits [B, C]."""
    B, S, H = last_hidden_state.shape
    itemsize = last_hidden_state.dtype.itemsize

    # --- tile selection ------------------------------------------------------
    if tb is None:
        tb = SUBLANE
    tb = _round_up(max(1, min(tb, _round_up(B, SUBLANE))), SUBLANE)
    if ts is None:
        # Keep the double-buffered hidden-state tile under ~8 MiB so the same
        # tiling fits comfortably inside v7x's 64 MiB VMEM as well as v5e/v6e.
        budget = 8 * 1024 * 1024
        max_ts = max(SUBLANE,
                     (budget // (2 * tb * H * itemsize)) // SUBLANE * SUBLANE)
        ts = min(_round_up(S, SUBLANE), max_ts)
    ts = _round_up(ts, SUBLANE)

    b_pad = _round_up(B, tb)
    s_pad = _round_up(S, ts)
    c_pad = _round_up(nb_output_classes, LANE)

    # --- zero-pad inputs (zeros do not perturb the sequence sum) -------------
    hs = last_hidden_state
    if (b_pad, s_pad) != (B, S):
        hs = jnp.zeros((b_pad, s_pad, H), hs.dtype).at[:B, :S, :].set(hs)

    padded_params = _pad_fc_params(params, ops)
    flat_params = []
    for w, bias in padded_params:
        flat_params.append(w)
        flat_params.append(bias)
    n_param_refs = len(flat_params)

    grid = (b_pad // tb, s_pad // ts)

    hs_spec = pl.BlockSpec((tb, ts, H), lambda b, s: (b, s, 0))
    # Full-array blocks with a constant index_map keep the tiny FC weights
    # resident in VMEM across all grid steps (no per-step re-DMA).
    param_specs = [pl.BlockSpec(p.shape, lambda b, s: (0, 0)) for p in flat_params]
    out_spec = pl.BlockSpec((tb, c_pad), lambda b, s: (b, 0))

    # --- cost estimate & explicit VMEM budget ---------------------------------
    fc_flops = sum(2 * B * op[1] * op[2] for op in ops if op[0] == "linear")
    param_bytes = sum(int(p.size) * 4 for p in flat_params)
    cost = pl.CostEstimate(
        flops=fc_flops + B * S * H,
        transcendentals=0,
        bytes_accessed=int(hs.size) * itemsize + param_bytes + b_pad * c_pad * 4,
    )

    hs_block_bytes = tb * ts * H * itemsize
    out_block_bytes = tb * c_pad * 4
    acc_bytes = tb * H * 4
    needed = 2 * hs_block_bytes + 2 * out_block_bytes + 2 * param_bytes + acc_bytes
    vmem_limit = int(min(64 * 1024 * 1024, max(2 * needed, 16 * 1024 * 1024)))

    kernel = functools.partial(_classifier_kernel, ops, 1.0 / float(S), n_param_refs)

    out_padded = pl.pallas_call(
        kernel,
        out_shape=jax.ShapeDtypeStruct((b_pad, c_pad), jnp.float32),
        grid_spec=pltpu.PrefetchScalarGridSpec(
            num_scalar_prefetch=0,
            grid=grid,
            in_specs=[hs_spec] + param_specs,
            out_specs=out_spec,
            scratch_shapes=[pltpu.VMEM((tb, H), jnp.float32)],
        ),
        compiler_params=pltpu.CompilerParams(
            dimension_semantics=("parallel", "arbitrary"),
            vmem_limit_bytes=vmem_limit,
        ),
        cost_estimate=cost,
    )(hs, *flat_params)

    return out_padded[:B, :nb_output_classes]


# ---------------------------------------------------------------------------
# Pure-JAX reference for correctness checking.
# ---------------------------------------------------------------------------
def reference_forward(last_hidden_state, params, ops):
    x = jnp.mean(last_hidden_state.astype(jnp.float32), axis=1)
    p = 0
    for op in ops:
        if op[0] == "linear":
            w, bias = params[p]
            x = x @ w + bias
            p += 1
        else:
            x = jnp.maximum(x, 0.0)
    return x


if __name__ == "__main__":
    # Small, forward-consistent shapes.
    B, S, H = 2, 16, 32           # batch, seq len, bert hidden size
    hidden_layers = [64, "relu"]  # config['...']['fully_connected_hidden_layers']
    nb_output_classes = 5         # config['...']['nb_output_classes']

    ops = build_fully_connected_spec(hidden_layers, H, nb_output_classes)

    key = jax.random.PRNGKey(0)
    key, k_hs, k_params = jax.random.split(key, 3)

    # TODO(synk): BertModel.from_pretrained + BertTokenizer (pretrained weights
    # and WordPiece tokenization) have no Pallas equivalent; the BERT
    # last_hidden_state is synthesized here as the kernel input.
    last_hidden_state = jax.random.normal(k_hs, (B, S, H), jnp.float32)

    params = init_fc_params(ops, k_params)

    # ts=8 forces a 2-step sequence-reduction grid even at this toy size so the
    # accumulator / pl.when(finalize) path is exercised.
    out = bert_classifier_forward(
        last_hidden_state, params, ops, nb_output_classes, ts=8)
    out = jax.block_until_ready(out)

    ref = reference_forward(last_hidden_state, params, ops)
    assert out.shape == (B, nb_output_classes)
    assert jnp.allclose(out, ref, atol=1e-4, rtol=1e-4)

    print("KERNEL_OK")
</pallas_src>

<mosaic_0001>
module attributes {stable_mosaic.version = 11 : i64} {
  func.func @_classifier_kernel(%arg0: i32, %arg1: i32, %arg2: memref<8x8x32xf32, #tpu.memory_space<vmem>>, %arg3: memref<32x128xf32, #tpu.memory_space<vmem>>, %arg4: memref<1x128xf32, #tpu.memory_space<vmem>>, %arg5: memref<128x128xf32, #tpu.memory_space<vmem>>, %arg6: memref<1x128xf32, #tpu.memory_space<vmem>>, %arg7: memref<8x128xf32, #tpu.memory_space<vmem>>, %arg8: memref<8x32xf32, #tpu.memory_space<vmem>>) attributes {dimension_semantics = [#tpu.dimension_semantics<parallel>, #tpu.dimension_semantics<arbitrary>], iteration_bounds = array<i64: 1, 2>, scalar_prefetch = 0 : i64, scratch_operands = 1 : i64, tpu.core_type = #tpu.core_type<tc>, window_params = [{transform_indices = @transform_0, window_bounds = array<i64: 8, 8, 32>}, {pipeline_mode = #tpu.pipeline_mode<synchronous>, transform_indices = @transform_1, window_bounds = array<i64: 32, 128>}, {pipeline_mode = #tpu.pipeline_mode<synchronous>, transform_indices = @transform_2, window_bounds = array<i64: 1, 128>}, {pipeline_mode = #tpu.pipeline_mode<synchronous>, transform_indices = @transform_3, window_bounds = array<i64: 128, 128>}, {pipeline_mode = #tpu.pipeline_mode<synchronous>, transform_indices = @transform_4, window_bounds = array<i64: 1, 128>}, {transform_indices = @transform_5, window_bounds = array<i64: 8, 128>}]} {
    %c0_i32 = arith.constant 0 : i32
    %0 = arith.cmpi eq, %arg1, %c0_i32 : i32
    %1 = arith.extui %0 : i1 to i32
    %c0_i32_0 = arith.constant 0 : i32
    %2 = arith.cmpi ne, %1, %c0_i32_0 : i32
    scf.if %2 {
      %cst_8 = arith.constant 0.000000e+00 : f32
      %11 = vector.broadcast %cst_8 : f32 to vector<8x32xf32>
      %c0_9 = arith.constant 0 : index
      %c0_10 = arith.constant 0 : index
      %12 = vector.load %arg8[%c0_9, %c0_10] : memref<8x32xf32, #tpu.memory_space<vmem>>, vector<8x32xf32>
      tpu.vector_store %arg8[%c0_9, %c0_10], %11 {strides = array<i32>} : memref<8x32xf32, #tpu.memory_space<vmem>>, vector<8x32xf32>,
    } else {
    }
    %c0 = arith.constant 0 : index
    %c0_1 = arith.constant 0 : index
    %3 = vector.load %arg8[%c0, %c0_1] : memref<8x32xf32, #tpu.memory_space<vmem>>, vector<8x32xf32>
    %c0_2 = arith.constant 0 : index
    %c0_3 = arith.constant 0 : index
    %c0_4 = arith.constant 0 : index
    %4 = vector.load %arg2[%c0_2, %c0_3, %c0_4] : memref<8x8x32xf32, #tpu.memory_space<vmem>>, vector<8x8x32xf32>
    %cst = arith.constant dense<0.000000e+00> : vector<8x32xf32>
    %5 = vector.multi_reduction <add>, %4, %cst [1] : vector<8x8x32xf32> to vector<8x32xf32>
    %6 = arith.addf %3, %5 : vector<8x32xf32>
    %c0_5 = arith.constant 0 : index
    %c0_6 = arith.constant 0 : index
    %7 = vector.load %arg8[%c0_5, %c0_6] : memref<8x32xf32, #tpu.memory_space<vmem>>, vector<8x32xf32>
    tpu.vector_store %arg8[%c0_5, %c0_6], %6 {strides = array<i32>} : memref<8x32xf32, #tpu.memory_space<vmem>>, vector<8x32xf32>,
    %c1_i32 = arith.constant 1 : i32
    %8 = arith.cmpi eq, %arg1, %c1_i32 : i32
    %9 = arith.extui %8 : i1 to i32
    %c0_i32_7 = arith.constant 0 : i32
    %10 = arith.cmpi ne, %9, %c0_i32_7 : i32
    scf.if %10 {
      %c0_8 = arith.constant 0 : index
      %c0_9 = arith.constant 0 : index
      %11 = vector.load %arg8[%c0_8, %c0_9] : memref<8x32xf32, #tpu.memory_space<vmem>>, vector<8x32xf32>
      %cst_10 = arith.constant 6.250000e-02 : f32
      %12 = vector.broadcast %cst_10 : f32 to vector<8x32xf32>
      %13 = arith.mulf %11, %12 : vector<8x32xf32>
      %c0_11 = arith.constant 0 : index
      %c0_12 = arith.constant 0 : index
      %14 = vector.load %arg3[%c0_11, %c0_12] : memref<32x128xf32, #tpu.memory_space<vmem>>, vector<32x128xf32>
      %c0_13 = arith.constant 0 : index
      %c0_14 = arith.constant 0 : index
      %15 = vector.load %arg4[%c0_13, %c0_14] : memref<1x128xf32, #tpu.memory_space<vmem>>, vector<1x128xf32>
      %cst_15 = arith.constant dense<0.000000e+00> : vector<8x128xf32>
      %16 = tpu.matmul %13, %14, %cst_15 {dimension_numbers = #tpu.dot_dimension_numbers<[1], [0], [0], [1], [0, 0, 1, 1], [], []>} : vector<8x32xf32>, vector<32x128xf32>, vector<8x128xf32> -> vector<8x128xf32>
      %17 = vector.broadcast %15 : vector<1x128xf32> to vector<8x128xf32>
      %18 = arith.addf %16, %17 : vector<8x128xf32>
      %c0_16 = arith.constant 0 : index
      %c0_17 = arith.constant 0 : index
      %19 = vector.load %arg5[%c0_16, %c0_17] : memref<128x128xf32, #tpu.memory_space<vmem>>, vector<128x128xf32>
      %c0_18 = arith.constant 0 : index
      %c0_19 = arith.constant 0 : index
      %20 = vector.load %arg6[%c0_18, %c0_19] : memref<1x128xf32, #tpu.memory_space<vmem>>, vector<1x128xf32>
      %cst_20 = arith.constant dense<0.000000e+00> : vector<8x128xf32>
      %21 = tpu.matmul %18, %19, %cst_20 {dimension_numbers = #tpu.dot_dimension_numbers<[1], [0], [0], [1], [0, 0, 1, 1], [], []>} : vector<8x128xf32>, vector<128x128xf32>, vector<8x128xf32> -> vector<8x128xf32>
      %22 = vector.broadcast %20 : vector<1x128xf32> to vector<8x128xf32>
      %23 = arith.addf %21, %22 : vector<8x128xf32>
      %cst_21 = arith.constant 0.000000e+00 : f32
      %24 = vector.broadcast %cst_21 : f32 to vector<8x128xf32>
      %25 = arith.maximumf %23, %24 : vector<8x128xf32>
      %c0_22 = arith.constant 0 : index
      %c0_23 = arith.constant 0 : index
      %26 = vector.load %arg7[%c0_22, %c0_23] : memref<8x128xf32, #tpu.memory_space<vmem>>, vector<8x128xf32>
      tpu.vector_store %arg7[%c0_22, %c0_23], %25 {strides = array<i32>} : memref<8x128xf32, #tpu.memory_space<vmem>>, vector<8x128xf32>,
    } else {
    }
    return
  }
  func.func @transform_0(%arg0: i32, %arg1: i32) -> (i32, i32, i32) {
    %c0_i32 = arith.constant 0 : i32
    %c0_i32_0 = arith.constant 0 : i32
    return %arg0, %arg1, %c0_i32 : i32, i32, i32
  }
  func.func @transform_1(%arg0: i32, %arg1: i32) -> (i32, i32) {
    %c0_i32 = arith.constant 0 : i32
    %c0_i32_0 = arith.constant 0 : i32
    %c0_i32_1 = arith.constant 0 : i32
    return %c0_i32, %c0_i32_0 : i32, i32
  }
  func.func @transform_2(%arg0: i32, %arg1: i32) -> (i32, i32) {
    %c0_i32 = arith.constant 0 : i32
    %c0_i32_0 = arith.constant 0 : i32
    %c0_i32_1 = arith.constant 0 : i32
    return %c0_i32, %c0_i32_0 : i32, i32
  }
  func.func @transform_3(%arg0: i32, %arg1: i32) -> (i32, i32) {
    %c0_i32 = arith.constant 0 : i32
    %c0_i32_0 = arith.constant 0 : i32
    %c0_i32_1 = arith.constant 0 : i32
    return %c0_i32, %c0_i32_0 : i32, i32
  }
  func.func @transform_4(%arg0: i32, %arg1: i32) -> (i32, i32) {
    %c0_i32 = arith.constant 0 : i32
    %c0_i32_0 = arith.constant 0 : i32
    %c0_i32_1 = arith.constant 0 : i32
    return %c0_i32, %c0_i32_0 : i32, i32
  }
  func.func @transform_5(%arg0: i32, %arg1: i32) -> (i32, i32) {
    %c0_i32 = arith.constant 0 : i32
    %c0_i32_0 = arith.constant 0 : i32
    return %arg0, %c0_i32 : i32, i32
  }
}

</mosaic_0001>

<bundles_post_ra>
// kernel: tpu_custom_call.1
= control target key start
LH: loop header
LB: loop body
LE: loop exit
PB: predicated region body
PF: predicated region fallthrough
CT: control target
= control target key end

     0   :  { %s1213_s0 = inlined_call_operand.hbm [shape: f32[8,16,32], index: 0, kind: input, shape index: {}]   ;;  %s1214_s1 = inlined_call_operand.hbm [shape: f32[32,128], index: 1, kind: input, shape index: {}]   ;;  %s1215_s2 = inlined_call_operand.vmem [shape: f32[1,128], index: 2, kind: input, shape index: {}]   ;;  %s1216_s3 = inlined_call_operand.hbm [shape: f32[128,128], index: 3, kind: input, shape index: {}]   ;;  %s1217_s4 = inlined_call_operand.vmem [shape: f32[1,128], index: 4, kind: input, shape index: {}]   ;;  %s1218_s5 = inlined_call_operand.hbm [shape: f32[8,128], index: 5, kind: output, shape index: {}]  }
   0x1   :  { %1224 = sst [smem:[#allocation13_spill]] %s1214_s1 }
   0x2   :  { %10 = vsyncpa [#allocation4], 0 }
   0x3   :  { %12 = vsyncpa [#allocation4 + $0x1], 0 }
   0x4   :  { %13 = vsyncpa [#allocation7], 0 }
   0x5   :  { %14 = vsyncpa [#allocation5], 0  ;;  %s1036_s18 = smov 0   ;;  %s1038_s19 = smov 0  }
   0x6   :  { %s1040_s20 = smov 0   ;;  %s1042_s21 = smov 0  }
   0x7   :  { %s1044_s22 = smov 0   ;;  %s1046_s23 = smov 0  }
   0x8 LB: > { %s1221_s24 = sadd.s32 4294967295, %s994_s23   ;;  %p48_p0 = scmp.ne.s32.totalorder %s982_s20, %s978_s19  ;;  %s994_s23 = sphi %s1046_s23, %s20_s23   ;;  %s990_s22 = sphi %s1044_s22, %s1240_s22   ;;  %s986_s21 = sphi %s1042_s21, %s1239_s21   ;;  %s982_s20 = sphi %s1040_s20, %s1238_s20   ;;  %s978_s19 = sphi %s1038_s19, %s1237_s19   ;;  %s974_s18 = sphi %s1036_s18, %s1236_s18  }
   0x9   : > { %p49_p1 = scmp.eq.s32.totalorder %s994_s23, 0  ;;  %p54_p2 = scmp.ne.s32.totalorder %s978_s19, %s974_s18 }
   0xa   : > { %p1071_p3 = scmp.eq.s32.totalorder %s1221_s24, 0  ;;  %p656_p4 = scmp.ge.s32.totalorder %s994_s23, 1 }
   0xb   : > { %p50_p5 = por %p49_p1, %p48_p0  ;;  %p175_p6 = scmp.lt.s32.totalorder %s994_s23, 3 }
   0xc   : > { %s1225_s25 = scalar_select %p1071_p3, 1, 0 }
   0xd   : > { %p1079_p7 = por %p1071_p3, %p54_p2  ;;  %p1083_p8 = pnand %p656_p4, %p175_p6 }
   0xe   : > { %s996_s28 = smov [#allocation6]   ;;  %p770_p11 = scmp.lt.s32.totalorder %s994_s23, 2 }
   0xf   : > { %s187_s29 = sshll.u32 %s996_s28, 4  ;;  %p757_p9 = pneg %p1083_p8  ;;  %s188_s29 = int_to_ptr.vmem [resolvable:$true] %s187_s29 }
  0x10   : > { %p1096_p12 = pnand %p770_p11, %p50_p5  ;;  %s843_s7 = scalar_lea.vmem %s188_s29, 512 }
  0x11   : > { %p1091_p10 = pnand %p757_p9, %p1071_p3  ;;  %p844_p0 = scmp.ne.s32.totalorder %s188_s29, %s843_s7 }
  0x12   : > { %p851_p4 = scmp.lt.s32.totalorder %s188_s29, %s188_s29  ;;  %p852_p6 = scmp.lt.s32.totalorder %s843_s7, %s843_s7 }
  0x13   : > { %p834_p13 = pneg %p1091_p10 }
  0x14   : > { %p853_p9 = por %p852_p6, %p851_p4 }
  0x15   : > { %p846_p1 = pnand %p844_p0, %p834_p13 }
  0x17   : > { %p847_p2 = pneg %p846_p1 }
  0x19   : > { %p854_p3 = pnand %p853_p9, %p847_p2 }
  0x1b   : > { %857 = shalt.err (!%p854_p3)
}
  0x1c   : > { %s1222_s8 = smov 128   ;;  %s1223_s9 = smov 8  }
  0x1d   : > { %s1230_s1 = sld [smem:[#allocation13_spill]]  ;;  %s999_s12 = smov [#allocation8]  }
  0x1e   : > { %s203_s13 = sshll.u32 %s999_s12, 4  ;;  %s204_s13 = int_to_ptr.vmem [resolvable:$true] %s203_s13 }
  0x1f   : > { %s869_s14 = scalar_lea.vmem %s204_s13, 2048  ;;  %p877_p0 = scmp.lt.s32.totalorder %s204_s13, %s204_s13 }
  0x20   : > { %p870_p5 = scmp.ne.s32.totalorder %s204_s13, %s869_s14  ;;  %p878_p1 = scmp.lt.s32.totalorder %s869_s14, %s869_s14 }
  0x22   : > { %p872_p3 = pnand %p870_p5, %p834_p13  ;;  %p879_p2 = por %p878_p1, %p877_p0 }
  0x23   : > { %760 = dma.hbm_to_vmem [thread:$0]  (!%p1091_p10), %s1230_s1, 512, %s188_s29, [#allocation7], %s1222_s8, %s1222_s8, %s1223_s9  }
  0x24   : > { %p873_p11 = pneg %p872_p3 }
  0x26   : > { %p880_p4 = pnand %p879_p2, %p873_p11 }
  0x28   : > { %883 = shalt.err (!%p880_p4)
}
  0x29   : > { %763 = dma.hbm_to_vmem [thread:$0]  (!%p1091_p10), %s1216_s3, 2048, %s204_s13, [#allocation7], %s1222_s8, %s1222_s8, %s1223_s9  }
  0x2a   : > { %s29_s17 = sadd.s32 1, %s990_s22  ;;  %s41_s18 = sadd.s32 1, %s982_s20 }
  0x2b   : > { %p30_p13 = scmp.ge.s32.totalorder %s29_s17, 2  ;;  %s220_s28 = sand.u32 1, %s982_s20  }
  0x2c   : > { %s660_s29 = sshll.u32 %s220_s28, 6  ;;  %s661_s30 = sshll.u32 %s990_s22, 7 }
  0x2d   : > { %s1242_s17 = smov (%p30_p13, %s29_s17), 0  ;;  %s232_s12 = scalar_lea.hbm %s1213_s0, %s661_s30 }
  0x2e   : > { %s37_s7 = ssub.s32 %s990_s22, %s1242_s17  ;;  %s224_s14 = scalar_lea.vmem [#allocation3], %s660_s29 }
  0x2f   : > { %p39_p6 = scmp.eq.s32.totalorder %s37_s7, 0  ;;  %s233_s15 = sshll.u32 %s224_s14, 4  ;;  %s234_s15 = int_to_ptr.vmem [resolvable:$true] %s233_s15 }
  0x30   : > { %s221_s16 = scalar_lea.sflag [#allocation4], %s220_s28  ;;  %p886_p10 = pneg %p1096_p12 }
  0x31   : > { %s1136_s13 = scalar_select %p39_p6, %s982_s20, %s41_s18  }
  0x32   : > { %s897_s24 = scalar_lea.vmem %s234_s15, 1024  ;;  %s1000_s8 = smov [#allocation3]  }
  0x33   : > { %p898_p9 = scmp.ne.s32.totalorder %s234_s15, %s897_s24  ;;  %s902_s9 = sshll.u32 %s1000_s8, 4  ;;  %s903_s9 = int_to_ptr.vmem [resolvable:$false] %s902_s9 }
  0x34   : > { %s904_s1 = scalar_lea.vmem %s903_s9, 2048  ;;  %p905_p11 = scmp.lt.s32.totalorder %s234_s15, %s903_s9 }
  0x35   : > { %p900_p5 = pnand %p898_p9, %p886_p10  ;;  %p906_p0 = scmp.lt.s32.totalorder %s904_s1, %s897_s24 }
  0x37   : > { %p901_p3 = pneg %p900_p5  ;;  %p907_p1 = por %p906_p0, %p905_p11 }
  0x39   : > { %p908_p2 = pnand %p907_p1, %p901_p3 }
  0x3b   : > { %911 = shalt.err (!%p908_p2)
}
  0x3c   : > { %s1001_s29 = smov 256   ;;  %s1231_s18 = smov 8  }
  0x3d   : > { %s1232_s28 = smov 128   ;;  %245 = sbr.rel (%p1083_p8) target bundleno = 520 (0x208), region = 40 }
  0x3e   : > { %767 = dma.hbm_to_vmem [thread:$0]  (!%p1096_p12), %s232_s12, 1024, %s234_s15, %s221_s16, %s1001_s29, %s1232_s28, %s1231_s18  }
  0x3f   : > { %s247_s30 = sand.u32 (!%p1083_p8), 1, %s978_s19  }
  0x40   : > { %s663_s8 = sshll.u32 (!%p1083_p8), %s247_s30, 6  ;;  %s248_s7 = scalar_lea.sflag (!%p1083_p8), [#allocation4], %s247_s30 }
  0x41   : > { %s251_s10 = scalar_lea.vmem (!%p1083_p8), [#allocation3], %s663_s8 }
  0x42   : > { %961 = dma.done.wait (%p1079_p7), %s248_s7, 1024  }
  0x43   : > { %963 = vsyncadd (%p1079_p7), %s248_s7, 4294966272  ;;  %p1233_p4 = scmp.ne.s32.totalorder %s1225_s25, 0 }
  0x45   : > { %965 = dma.done.wait (%p1233_p4), [#allocation7], 2560  }
  0x46   : > { %967 = vsyncadd (%p1233_p4), [#allocation7], 4294964736  ;;  %p666_p12 = scmp.ne.s32.totalorder %s986_s21, 0 }
  0x48   : > { %285 = sbr.rel (%p666_p12) target bundleno = 79 (0x4f), region = 56 }
  0x4d   : > { %vm286_vm0 = vcmask 261120   ;;  %v1002_v0 = vmov 0.0  }
  0x4e   : > { %287 = vst.msk [vmem:[#allocation2] sm:$0xff] %vm286_vm0, %v1002_v0 }
  0x4f PF: > { %v289_v1 = vld [vmem:[%s251_s10] sm:$0xff]  ;;  %v290_v2 = vld [vmem:[%s251_s10 + $0x8] sm:$0xff]  ;;  %vm297_vm1 = vcmask 261120   ;;  %v291_v3 = vld [vmem:[%s251_s10 + $0x10] sm:$0xff]  ;;  %vm362_vm2 = vcmask 1041409   ;;  %vm364_vm3 = vcmask 1042434  }
  0x50   : > { %v292_v4 = vld [vmem:[%s251_s10 + $0x18] sm:$0xff]  ;;  %v293_v5 = vld [vmem:[%s251_s10 + $0x20] sm:$0xff]  ;;  %v298_v6 = vsel %vm297_vm1, %v289_v1, 0.0  ;;  %v305_v7 = vsel %vm297_vm1, %v290_v2, 0.0  ;;  %v294_v8 = vld [vmem:[%s251_s10 + $0x28] sm:$0xff]  ;;  %v312_v13 = vsel %vm297_vm1, %v291_v3, 0.0 }
  0x51   : > { %v295_v9 = vld [vmem:[%s251_s10 + $0x30] sm:$0xff]  ;;  %v296_v10 = vld [vmem:[%s251_s10 + $0x38] sm:$0xff]  ;;  %v299_v11 = vrot.slane %v298_v6, 4  ;;  %v306_v12 = vrot.slane %v305_v7, 4  ;;  %v313_v14 = vrot.slane %v312_v13, 4  ;;  %v319_v15 = vsel %vm297_vm1, %v292_v4, 0.0 }
  0x52   : > { %v326_v16 = vsel %vm297_vm1, %v293_v5, 0.0  ;;  %v333_v17 = vsel %vm297_vm1, %v294_v8, 0.0  ;;  %v320_v20 = vrot.slane %v319_v15, 4  ;;  %v340_v24 = vsel %vm297_vm1, %v295_v9, 0.0  ;;  %p667_p7 = scmp.ne.s32.totalorder %s986_s21, 1 }
  0x53   : > { %v300_v18 = vadd.f32 %v299_v11, %v298_v6  ;;  %v307_v19 = vadd.f32 %v306_v12, %v305_v7  ;;  %v327_v21 = vrot.slane %v326_v16, 4  ;;  %v314_v22 = vadd.f32 %v313_v14, %v312_v13 }
  0x54   : > { %v334_v23 = vrot.slane %v333_v17, 4  ;;  %v347_v25 = vsel %vm297_vm1, %v296_v10, 0.0  ;;  %vm366_vm4 = vcmask 1043459   ;;  %v321_v28 = vadd.f32 %v320_v20, %v319_v15 }
  0x55   : > { %v301_v26 = vrot.slane %v300_v18, 2  ;;  %v308_v27 = vrot.slane %v307_v19, 2  ;;  %v328_v29 = vadd.f32 %v327_v21, %v326_v16  ;;  %v315_v30 = vrot.slane %v314_v22, 2  ;;  %v288_v5 = vld [vmem:[#allocation2] sm:$0xff] }
  0x56   : > { %v335_v31 = vadd.f32 %v334_v23, %v333_v17  ;;  %v341_v32 = vrot.slane %v340_v24, 4  ;;  %v348_v33 = vrot.slane %v347_v25, 4  ;;  %v322_v36 = vrot.slane %v321_v28, 2 }
  0x57   : > { %v302_v34 = vadd.f32 %v301_v26, %v300_v18  ;;  %v309_v35 = vadd.f32 %v308_v27, %v307_v19  ;;  %v329_v37 = vrot.slane %v328_v29, 2  ;;  %v316_v38 = vadd.f32 %v315_v30, %v314_v22 }
  0x58   : > { %v336_v39 = vrot.slane %v335_v31, 2  ;;  %v342_v40 = vadd.f32 %v341_v32, %v340_v24  ;;  %v349_v41 = vadd.f32 %v348_v33, %v347_v25  ;;  %v323_v44 = vadd.f32 %v322_v36, %v321_v28 }
  0x59   : > { %v303_v42 = vrot.slane %v302_v34, 1  ;;  %v310_v43 = vrot.slane %v309_v35, 1  ;;  %v330_v45 = vadd.f32 %v329_v37, %v328_v29  ;;  %v317_v46 = vrot.slane %v316_v38, 1 }
  0x5a   : > { %v337_v47 = vadd.f32 %v336_v39, %v335_v31  ;;  %v343_v48 = vrot.slane %v342_v40, 2  ;;  %v350_v49 = vrot.slane %v349_v41, 2  ;;  %v324_v52 = vrot.slane %v323_v44, 1 }
  0x5b   : > { %v304_v50 = vadd.f32 %v303_v42, %v302_v34  ;;  %v311_v51 = vadd.f32 %v310_v43, %v309_v35  ;;  %v331_v53 = vrot.slane %v330_v45, 1  ;;  %v318_v54 = vadd.f32 %v317_v46, %v316_v38 }
  0x5c   : > { %v338_v55 = vrot.slane %v337_v47, 1  ;;  %v344_v56 = vadd.f32 %v343_v48, %v342_v40  ;;  %v351_v57 = vadd.f32 %v350_v49, %v349_v41  ;;  %v325_v58 = vadd.f32 %v324_v52, %v323_v44 }
  0x5d   : > { %v332_v59 = vadd.f32 %v331_v53, %v330_v45  ;;  %v363_v60 = vsel %vm362_vm2, %v311_v51, %v304_v50  ;;  %vm368_vm5 = vcmask 1044484   ;;  %vm370_vm6 = vcmask 1045509  }
  0x5e   : > { %v339_v61 = vadd.f32 %v338_v55, %v337_v47  ;;  %v345_v62 = vrot.slane %v344_v56, 1  ;;  %v352_v63 = vrot.slane %v351_v57, 1  ;;  %v365_v0 = vsel %vm364_vm3, %v318_v54, %v363_v60 }
  0x5f   : > { %v367_v1 = vsel %vm366_vm4, %v325_v58, %v365_v0  ;;  %vm372_vm7 = vcmask 1046534   ;;  %vm374_vm8 = vcmask 1047559  }
  0x60   : > { %v346_v2 = vadd.f32 %v345_v62, %v344_v56  ;;  %v353_v3 = vadd.f32 %v352_v63, %v351_v57  ;;  %v369_v4 = vsel %vm368_vm5, %v332_v59, %v367_v1 }
  0x61   : > { %v371_v6 = vsel %vm370_vm6, %v339_v61, %v369_v4 }
  0x62   : > { %v373_v7 = vsel %vm372_vm7, %v346_v2, %v371_v6  ;;  %382 = sbr.rel (%p667_p7) target bundleno = 505 (0x1f9), region = 60 }
  0x63   : > { %v375_v8 = vsel %vm374_vm8, %v353_v3, %v373_v7 }
  0x64   : > { %v377_v9 = vadd.f32 %v375_v8, %v288_v5 }
  0x66   : > { %378 = vst.msk [vmem:[#allocation2] sm:$0xff] %vm297_vm1, %v377_v9 }
  0x67   : > { %v388_v10 = vld [vmem:[#allocation6 + $0x18] sm:$0xff]  ;;  %v1003_v11 = vmov 0.0   ;;  %v387_v12 = vld [vmem:[#allocation6 + $0x10] sm:$0xff]  ;;  %vm1004_vm9 = vmmov 0   ;;  %v386_v16 = vld [vmem:[#allocation6 + $0x8] sm:$0xff] }
  0x68   : > { %697 = vmatprep.subr.mxu0 %v1003_v11  ;;  %705 = vmatprep.mubr.msk.f32.mxu0 %vm1004_vm9, %v1003_v11  ;;  %v484_v13 = vld [vmem:[#allocation8 + $0x78] sm:$0xff]  ;;  %v483_v15 = vld [vmem:[#allocation8 + $0x70] sm:$0xff]  ;;  %v482_v17 = vld [vmem:[#allocation8 + $0x68] sm:$0xff] }
  0x69   : > { %698 = vmatpush3.msra.mxu0 %v388_v10  ;;  %708 = vmatprep.subr.mxu1 %v1003_v11  ;;  %v385_v18 = vld [vmem:[#allocation6] sm:$0xff]  ;;  %v480_v21 = vld [vmem:[#allocation8 + $0x58] sm:$0xff]  ;;  %v479_v22 = vld [vmem:[#allocation8 + $0x50] sm:$0xff] }
  0x6a   : > { %699 = vmatprep.subr.mxu0 %v1003_v11  ;;  %709 = vmatpush3.msra.mxu1 %v484_v13  ;;  %v481_v20 = vld [vmem:[#allocation8 + $0x60] sm:$0xff]  ;;  %v478_v23 = vld [vmem:[#allocation8 + $0x48] sm:$0xff]  ;;  %v476_v25 = vld [vmem:[#allocation8 + $0x38] sm:$0xff] }
  0x6b   : > { %700 = vmatpush3.msra.mxu0 %v387_v12  ;;  %710 = vmatprep.subr.mxu1 %v1003_v11  ;;  %v477_v24 = vld [vmem:[#allocation8 + $0x40] sm:$0xff]  ;;  %v475_v26 = vld [vmem:[#allocation8 + $0x30] sm:$0xff]  ;;  %v474_v27 = vld [vmem:[#allocation8 + $0x28] sm:$0xff] }
  0x6c   : > { %701 = vmatprep.subr.mxu0 %v1003_v11  ;;  %711 = vmatpush3.msra.mxu1 %v483_v15  ;;  %v473_v28 = vld [vmem:[#allocation8 + $0x20] sm:$0xff]  ;;  %v472_v29 = vld [vmem:[#allocation8 + $0x18] sm:$0xff]  ;;  %v471_v30 = vld [vmem:[#allocation8 + $0x10] sm:$0xff] }
  0x6d   : > { %v383_v14 = vld [vmem:[#allocation2] sm:$0xff]  ;;  %702 = vmatpush3.msra.mxu0 %v386_v16  ;;  %712 = vmatprep.subr.mxu1 %v1003_v11  ;;  %v470_v31 = vld [vmem:[#allocation8 + $0x8] sm:$0xff]  ;;  %v469_v32 = vld [vmem:[#allocation8] sm:$0xff] }
  0x6e   : > { %v384_v19 = vmul.f32 0.0625, %v383_v14  ;;  %703 = vmatprep.subr.mxu0 %v1003_v11  ;;  %713 = vmatpush3.msra.mxu1 %v482_v17  ;;  %v668_v33 = vld [vmem:[%s1215_s2] ss:$0 sm:$0xff] }
  0x6f   : > { %704 = vmatpush3.msra.mxu0 %v385_v18  ;;  %714 = vmatprep.subr.mxu1 %v1003_v11  ;;  %v670_v37 = vld [vmem:[%s1217_s4] ss:$0 sm:$0xff] }
  0x70   : > { %706 = vmatmul.mubr.msk.f32.vlgmr.msra.gmra.mxu0 %vm297_vm1, %v384_v19  ;;  %715 = vmatpush3.msra.mxu1 %v481_v20 }
  0x71   : > { %716 = vmatprep.subr.mxu1 %v1003_v11  ;;  %740 = vmatprep.mubr.msk.f32.mxu1 %vm1004_vm9, %v1003_v11 }
  0x72   : > { %717 = vmatpush3.msra.mxu1 %v480_v21 }
  0x73   : > { %718 = vmatprep.subr.mxu1 %v1003_v11 }
  0x74   : > { %719 = vmatpush3.msra.mxu1 %v479_v22 }
  0x75   : > { %720 = vmatprep.subr.mxu1 %v1003_v11 }
  0x76   : > { %721 = vmatpush3.msra.mxu1 %v478_v23 }
  0x77   : > { %722 = vmatprep.subr.mxu1 %v1003_v11 }
  0x78   : > { %723 = vmatpush3.msra.mxu1 %v477_v24 }
  0x79   : > { %724 = vmatprep.subr.mxu1 %v1003_v11 }
  0x7a   : > { %725 = vmatpush3.msra.mxu1 %v476_v25 }
  0x7b   : > { %726 = vmatprep.subr.mxu1 %v1003_v11 }
  0x7c   : > { %727 = vmatpush3.msra.mxu1 %v475_v26 }
  0x7d   : > { %728 = vmatprep.subr.mxu1 %v1003_v11 }
  0x7e   : > { %729 = vmatpush3.msra.mxu1 %v474_v27 }
  0x7f   : > { %730 = vmatprep.subr.mxu1 %v1003_v11 }
  0x80   : > { %731 = vmatpush3.msra.mxu1 %v473_v28 }
  0x81   : > { %732 = vmatprep.subr.mxu1 %v1003_v11 }
  0x82   : > { %733 = vmatpush3.msra.mxu1 %v472_v29 }
  0x83   : > { %734 = vmatprep.subr.mxu1 %v1003_v11 }
  0x84   : > { %735 = vmatpush3.msra.mxu1 %v471_v30 }
  0x85   : > { %736 = vmatprep.subr.mxu1 %v1003_v11 }
  0x86   : > { %737 = vmatpush3.msra.mxu1 %v470_v31 }
  0x87   : > { %738 = vmatprep.subr.mxu1 %v1003_v11 }
  0x88   : > { %739 = vmatpush3.msra.mxu1 %v469_v32 }
 0x130   : > { %v465_v34 = vpop.f32.mrf.mxu0 }
 0x131   : > { %v466_v35 = vadd.f32 %v668_v33, %v465_v34 }
 0x132   : > { %v707_v36 = vpop.f32.mrf.mxu0 }
 0x133   : > { %741 = vmatmul.mubr.f32.vlgmr.msra.gmra.mxu1 %v466_v35 }
 0x1f3   : > { %v558_v38 = vpop.f32.mrf.mxu1 }
 0x1f4   : > { %v559_v39 = vadd.f32 %v670_v37, %v558_v38 }
 0x1f5   : > { %v742_v40 = vpop.f32.mrf.mxu1 }
 0x1f6   : > { %v562_v41 = vmax.f32 %v559_v39, 0.0 }
 0x1f8   : > { %563 = vst [vmem:[#allocation9] sm:$0xff] %v562_v41 }
 0x1f9 PF: > { %s1234_s26 = sadd.s32 4294967295, %s994_s23   ;;  %s1005_s6 = smov [#allocation9]  }
 0x1fa   : > { %p1180_p8 = scmp.eq.s32.totalorder %s1234_s26, 1  ;;  %s573_s9 = sshll.u32 %s1005_s6, 4  ;;  %s574_s9 = int_to_ptr.vmem [resolvable:$true] %s573_s9 }
 0x1fb   : > { %s912_s11 = scalar_lea.vmem %s574_s9, 128  ;;  %p919_p9 = scmp.lt.s32.totalorder %s574_s9, %s574_s9 }
 0x1fc   : > { %p913_p13 = scmp.ne.s32.totalorder %s574_s9, %s912_s11  ;;  %p920_p5 = scmp.lt.s32.totalorder %s912_s11, %s912_s11 }
 0x1fe   : > { %p914_p6 = pnand %p913_p13, %p1180_p8  ;;  %p921_p3 = por %p920_p5, %p919_p9 }
 0x200   : > { %p915_p10 = pneg %p914_p6 }
 0x202   : > { %p922_p11 = pnand %p921_p3, %p915_p10 }
 0x204   : > { %925 = shalt.err (!%p922_p11)
}
 0x205   : > { %754 = dma.vmem_to_hbm [thread:$0]  (%p1180_p8), %s574_s9, 128, %s1218_s5, [#allocation5]  }
 0x206   : > { %969 = dma.done.wait (%p1180_p8), [#allocation5], 128  }
 0x207   : > { %971 = vsyncadd (%p1180_p8), [#allocation5], 4294967168 }
 0x208 PF: > { %s20_s23 = sadd.s32 1, %s994_s23   ;;  %s1236_s18 = smov %s978_s19 }
 0x209   : > { %p17_p0 = scmp.ge.s32.totalorder %s20_s23, 4   ;;  %s1237_s19 = smov %s982_s20 }
 0x20a   : > { %s1238_s20 = smov %s1136_s13  ;;  %s1239_s21 = smov %s990_s22 }
 0x20b   : > { %s1240_s22 = smov %s1242_s17  ;;  %19 = sbr.rel (!%p17_p0) target bundleno = 8 (0x8), region = 94 }
 0x210   :  { %586 = vsyncpa [#allocation4], 1 }
 0x211   :  { %588 = vsyncpa [#allocation4 + $0x1], 1 }
 0x212   :  { %589 = vsyncpa [#allocation7], 1 }
 0x213   :  { %590 = vsyncpa [#allocation5], 1 }
 0x214   :  { %592 = vsyncpa [#allocation5 + $0x1], 1 }

</bundles_post_ra>
